<compile_context>
chip_gen: v7x
topology: tpu7x:2x2x1
jax: 0.10.0
libtpu: 0.0.40
codegen_flags: <defaults>
</compile_context>

<pallas_src>
import functools

import jax
import jax.numpy as jnp
from jax.experimental import pallas as pl
from jax.experimental.pallas import tpu as pltpu  # noqa: F401  (no TPU-specific params needed)

EPS = 1e-5  # PyTorch BatchNorm default eps


def smodel_kernel(x_ref, w1_ref, w2_ref, o_ref, *, n_batch, t_len, n_joint, n_person):
    """Fused SModel forward.

    x_ref : (N*T, V*M) f32 -- rows = (batch n, time t), cols = (joint v, person m).
    w1_ref: (1, C)     f32 -- tcn1 1x1-conv weights (out-channel on lanes).
    w2_ref: (C, C)     f32 -- tcn2 1x1-conv weights, torch (out, in) layout.
    o_ref : (N, C, V*M) f32 -- out[n, c, v*M+m] = mean_t relu(field) for (n, m, c, v).
    """
    vm = n_joint * n_person
    x = x_ref[...]

    # ---- data_bn: BatchNorm1d -- per-column (= per (m, v) channel) stats over (n, t) rows.
    inv_nt = 1.0 / (n_batch * t_len)
    c_mean = jnp.sum(x, axis=0, keepdims=True) * inv_nt            # (1, VM)
    c_sq = jnp.sum(x * x, axis=0, keepdims=True) * inv_nt          # one-pass E[x^2]
    c_var = jnp.maximum(c_sq - c_mean * c_mean, 0.0)               # biased var, clamped >= 0
    u = (x - c_mean) * jax.lax.rsqrt(c_var + EPS)                  # (NT, VM)

    # ---- global stats of u over every (n*m, t, v) element (the BatchNorm2d population).
    inv_r = 1.0 / (n_batch * t_len * vm)
    s1 = jnp.sum(u, axis=0, keepdims=True)
    s2 = jnp.sum(u * u, axis=0, keepdims=True)
    m1 = jnp.sum(s1, axis=1, keepdims=True) * inv_r                # (1, 1) mean(u)
    v1 = jnp.maximum(
        jnp.sum(s2, axis=1, keepdims=True) * inv_r - m1 * m1, 0.0)  # (1, 1) var(u), clamped
    uc = u - m1                                                    # centered field

    # ---- fold (1x1 conv + BN) x3 into per-output-channel gains (exact in real arithmetic):
    #   bn1(u*w1[c] + b1[c])          = uc * g1[c],  g1 = w1 / sqrt(v1*w1^2 + eps)
    #   bn2(sum_i g1[i]*w2[c,i]*uc)   = uc * g2[c],  h = w2 @ g1, g2 = h / sqrt(v1*h^2 + eps)
    #   bn3(uc * g2[c])               = uc * g3[c],  g3 = g2 / sqrt(v1*g2^2 + eps)
    # (conv biases b1/b2 vanish exactly under the following BN mean subtraction.)
    w1 = w1_ref[...]                                               # (1, C), channel on lanes
    w2 = w2_ref[...]                                               # (C, C) = (out, in)
    g1 = w1 * jax.lax.rsqrt(v1 * w1 * w1 + EPS)                    # (1, C)
    h = jnp.sum(w2 * g1, axis=1, keepdims=True)                    # (C, 1) lane-reduce, no MXU
    g2 = h * jax.lax.rsqrt(v1 * h * h + EPS)                       # (C, 1)
    g3 = g2 * jax.lax.rsqrt(v1 * g2 * g2 + EPS)                    # (C, 1)
    gp = jnp.maximum(g3, 0.0)                                      # relu(+g3)
    gn = jnp.maximum(-g3, 0.0)                                     # relu(-g3)

    # ---- temporal means of relu(+-uc) per (n, column).  The (N*T, VM) -> (N, T, VM) split only
    #      touches leading dims (lane dim unchanged) and T % 8 == 0, so it is relayout-free.
    uc3 = uc.reshape(n_batch, t_len, vm)                            # (N, T, VM)
    pos = jnp.mean(jnp.maximum(uc3, 0.0), axis=1)                   # (N, VM)  mean_t relu(uc)
    neg = pos - jnp.mean(uc3, axis=1)                               # relu(-x) = relu(x) - x

    # ---- single fused epilogue: broadcast outer product over channels + ONE store.
    #   out[n, c, v*M+m] = gp[c] * pos[n, v*M+m] + gn[c] * neg[n, v*M+m]
    #                    = mean_t relu(uc * g3[c]) for sequence (n, m), joint v.
    out = gp[None, :, :] * pos[:, None, :] + gn[None, :, :] * neg[:, None, :]   # (N, C, VM)
    o_ref[...] = out


def smodel_forward(x, params):
    """SModel.forward.  x: (N, 1, T, V, M) f32 -> (out (N*M, C, V), a=0)."""
    N, Cin, T, V, M = x.shape
    assert Cin == 1, "SModel is built with in_channels=1; the fused kernel relies on it."
    assert T % 8 == 0, "T must be a multiple of 8 for a relayout-free temporal row split."
    C = params["w1"].shape[1]

    # Pure reshape of the contiguous (N, 1, T, V, M) tensor: rows (n, t), cols (v, m). Free.
    xf = x.reshape(N * T, V * M)

    kern = functools.partial(
        smodel_kernel, n_batch=N, t_len=T, n_joint=V, n_person=M)
    out = pl.pallas_call(
        kern,
        out_shape=jax.ShapeDtypeStruct((N, C, V * M), jnp.float32),
        in_specs=[
            pl.BlockSpec((N * T, V * M), lambda: (0, 0)),
            pl.BlockSpec((1, C), lambda: (0, 0)),
            pl.BlockSpec((C, C), lambda: (0, 0)),
        ],
        out_specs=pl.BlockSpec((N, C, V * M), lambda: (0, 0, 0)),
    )(xf, params["w1"], params["w2"])

    # Layout plumbing only (138 KiB reduced result): (n, c, v, m) -> (n, m, c, v) -> (N*M, C, V).
    y = out.reshape(N, C, V, M).transpose(0, 3, 1, 2).reshape(N * M, C, V)
    return y, 0


def make_params(key, c_in=1, c_out=32):
    """Parameters matching conv_init (kaiming fan_out) / bn_init of a fresh SModel.

    Conv biases are init'd to 0 by conv_init AND are exactly cancelled by the following
    training-mode BatchNorms, so they are not materialised.  All BatchNorm gammas are 1 and
    betas are 0, so the BNs are pure batch-statistics normalisations and carry no parameters.
    """
    k1, k2 = jax.random.split(key)
    std = (2.0 / (c_out * 1 * 1)) ** 0.5          # kaiming_normal_(fan_out), 1x1 kernel
    W1 = jax.random.normal(k1, (c_out, c_in, 1, 1), jnp.float32) * std   # torch (O, I, kh, kw)
    W2 = jax.random.normal(k2, (c_out, c_out, 1, 1), jnp.float32) * std
    return {
        "w1": W1[:, 0, 0, 0].reshape(1, c_out),   # (1, C): tcn1 weights, channel on lanes
        "w2": W2[:, :, 0, 0],                     # (C, C): tcn2 weights, torch (out, in)
    }


def smodel_reference(x, params):
    """Literal (unfused) JAX transcription of SModel.forward, used only for validation."""
    N, Cin, T, V, M = x.shape
    w1 = params["w1"][0]          # (C,)
    w2 = params["w2"]             # (C, C) = (out, in)

    def bn(y, axes):              # training-mode BatchNorm: gamma=1, beta=0, biased var
        mu = jnp.mean(y, axis=axes, keepdims=True)
        var = jnp.mean((y - mu) ** 2, axis=axes, keepdims=True)
        return (y - mu) * jax.lax.rsqrt(var + EPS)

    xb = jnp.transpose(x, (0, 4, 3, 1, 2)).reshape(N, M * V * Cin, T)      # data_bn input
    xb = bn(xb, (0, 2))
    xc = xb.reshape(N, M, V, Cin, T).transpose(0, 1, 3, 4, 2).reshape(N * M, Cin, T, V)

    y = xc[:, 0][:, None, :, :] * w1[None, :, None, None]                   # tcn1 (bias 0)
    y = bn(y, (0, 2, 3))
    z = jnp.einsum("oc,nctv->notv", w2, y, precision="highest")             # tcn2 (bias 0)
    z = bn(z, (0, 2, 3))
    g = jnp.maximum(bn(z, (0, 2, 3)), 0.0)                                  # unit_gcn BN + ReLU
    return jnp.maximum(g, 0.0).mean(axis=2), 0                              # outer ReLU + mean_T


if __name__ == "__main__":
    # SModel(num_point=90, num_person=6, in_channels=1, T=32) fixes V=90, M=6, Cin=1, C=32.
    N, Cin, T, V, M, C = 2, 1, 8, 90, 6, 32
    key = jax.random.PRNGKey(0)
    kx, kp = jax.random.split(key)
    x = jax.random.normal(kx, (N, Cin, T, V, M), jnp.float32)
    params = make_params(kp, c_in=Cin, c_out=C)

    y, a = smodel_forward(x, params)
    y = jax.block_until_ready(y)
    assert y.shape == (N * M, C, V) and a == 0

    # Validate the fused / algebraically folded kernel against a literal JAX transcription.
    y_ref, _ = smodel_reference(x, params)
    y_ref = jax.block_until_ready(y_ref)
    err = float(jnp.max(jnp.abs(y - y_ref)))
    assert jnp.allclose(y, y_ref, rtol=1e-2, atol=1e-2), f"max |diff| = {err}"

    print("KERNEL_OK")
</pallas_src>

<mosaic_0001>
module attributes {stable_mosaic.version = 11 : i64} {
  func.func @smodel_kernel(%arg0: memref<16x540xf32, #tpu.memory_space<vmem>>, %arg1: memref<1x32xf32, #tpu.memory_space<vmem>>, %arg2: memref<32x32xf32, #tpu.memory_space<vmem>>, %arg3: memref<2x32x540xf32, #tpu.memory_space<vmem>>) attributes {dimension_semantics = [], scalar_prefetch = 0 : i64, scratch_operands = 0 : i64, tpu.core_type = #tpu.core_type<tc>} {
    %c0 = arith.constant 0 : index
    %c0_0 = arith.constant 0 : index
    %0 = vector.load %arg0[%c0, %c0_0] : memref<16x540xf32, #tpu.memory_space<vmem>>, vector<16x540xf32>
    %cst = arith.constant dense<0.000000e+00> : vector<540xf32>
    %1 = vector.multi_reduction <add>, %0, %cst [0] : vector<16x540xf32> to vector<540xf32>
    %2 = vector.shape_cast %1 : vector<540xf32> to vector<1x540xf32>
    %cst_1 = arith.constant 6.250000e-02 : f32
    %3 = vector.broadcast %cst_1 : f32 to vector<1x540xf32>
    %4 = arith.mulf %2, %3 : vector<1x540xf32>
    %5 = arith.mulf %0, %0 : vector<16x540xf32>
    %cst_2 = arith.constant dense<0.000000e+00> : vector<540xf32>
    %6 = vector.multi_reduction <add>, %5, %cst_2 [0] : vector<16x540xf32> to vector<540xf32>
    %7 = vector.shape_cast %6 : vector<540xf32> to vector<1x540xf32>
    %cst_3 = arith.constant 6.250000e-02 : f32
    %8 = vector.broadcast %cst_3 : f32 to vector<1x540xf32>
    %9 = arith.mulf %7, %8 : vector<1x540xf32>
    %10 = arith.mulf %4, %4 : vector<1x540xf32>
    %11 = arith.subf %9, %10 : vector<1x540xf32>
    %cst_4 = arith.constant 0.000000e+00 : f32
    %12 = vector.broadcast %cst_4 : f32 to vector<1x540xf32>
    %13 = arith.maximumf %11, %12 : vector<1x540xf32>
    %14 = vector.broadcast %4 : vector<1x540xf32> to vector<16x540xf32>
    %15 = arith.subf %0, %14 : vector<16x540xf32>
    %cst_5 = arith.constant 9.99999974E-6 : f32
    %16 = vector.broadcast %cst_5 : f32 to vector<1x540xf32>
    %17 = arith.addf %13, %16 : vector<1x540xf32>
    %18 = math.rsqrt %17 : vector<1x540xf32>
    %19 = vector.broadcast %18 : vector<1x540xf32> to vector<16x540xf32>
    %20 = arith.mulf %15, %19 : vector<16x540xf32>
    %cst_6 = arith.constant dense<0.000000e+00> : vector<540xf32>
    %21 = vector.multi_reduction <add>, %20, %cst_6 [0] : vector<16x540xf32> to vector<540xf32>
    %22 = vector.shape_cast %21 : vector<540xf32> to vector<1x540xf32>
    %23 = arith.mulf %20, %20 : vector<16x540xf32>
    %cst_7 = arith.constant dense<0.000000e+00> : vector<540xf32>
    %24 = vector.multi_reduction <add>, %23, %cst_7 [0] : vector<16x540xf32> to vector<540xf32>
    %25 = vector.shape_cast %24 : vector<540xf32> to vector<1x540xf32>
    %cst_8 = arith.constant dense<0.000000e+00> : vector<1xf32>
    %26 = vector.multi_reduction <add>, %22, %cst_8 [1] : vector<1x540xf32> to vector<1xf32>
    %27 = vector.shape_cast %26 : vector<1xf32> to vector<1x1xf32>
    %cst_9 = arith.constant 1.15740739E-4 : f32
    %28 = vector.broadcast %cst_9 : f32 to vector<1x1xf32>
    %29 = arith.mulf %27, %28 : vector<1x1xf32>
    %cst_10 = arith.constant dense<0.000000e+00> : vector<1xf32>
    %30 = vector.multi_reduction <add>, %25, %cst_10 [1] : vector<1x540xf32> to vector<1xf32>
    %31 = vector.shape_cast %30 : vector<1xf32> to vector<1x1xf32>
    %cst_11 = arith.constant 1.15740739E-4 : f32
    %32 = vector.broadcast %cst_11 : f32 to vector<1x1xf32>
    %33 = arith.mulf %31, %32 : vector<1x1xf32>
    %34 = arith.mulf %29, %29 : vector<1x1xf32>
    %35 = arith.subf %33, %34 : vector<1x1xf32>
    %cst_12 = arith.constant 0.000000e+00 : f32
    %36 = vector.broadcast %cst_12 : f32 to vector<1x1xf32>
    %37 = arith.maximumf %35, %36 : vector<1x1xf32>
    %38 = vector.broadcast %29 : vector<1x1xf32> to vector<16x540xf32>
    %39 = arith.subf %20, %38 : vector<16x540xf32>
    %c0_13 = arith.constant 0 : index
    %c0_14 = arith.constant 0 : index
    %40 = vector.load %arg1[%c0_13, %c0_14] : memref<1x32xf32, #tpu.memory_space<vmem>>, vector<1x32xf32>
    %c0_15 = arith.constant 0 : index
    %c0_16 = arith.constant 0 : index
    %41 = vector.load %arg2[%c0_15, %c0_16] : memref<32x32xf32, #tpu.memory_space<vmem>>, vector<32x32xf32>
    %42 = vector.broadcast %37 : vector<1x1xf32> to vector<1x32xf32>
    %43 = arith.mulf %42, %40 : vector<1x32xf32>
    %44 = arith.mulf %43, %40 : vector<1x32xf32>
    %cst_17 = arith.constant 9.99999974E-6 : f32
    %45 = vector.broadcast %cst_17 : f32 to vector<1x32xf32>
    %46 = arith.addf %44, %45 : vector<1x32xf32>
    %47 = math.rsqrt %46 : vector<1x32xf32>
    %48 = arith.mulf %40, %47 : vector<1x32xf32>
    %49 = vector.broadcast %48 : vector<1x32xf32> to vector<32x32xf32>
    %50 = arith.mulf %41, %49 : vector<32x32xf32>
    %cst_18 = arith.constant dense<0.000000e+00> : vector<32xf32>
    %51 = vector.multi_reduction <add>, %50, %cst_18 [1] : vector<32x32xf32> to vector<32xf32>
    %52 = vector.shape_cast %51 : vector<32xf32> to vector<32x1xf32>
    %53 = vector.broadcast %37 : vector<1x1xf32> to vector<32x1xf32>
    %54 = arith.mulf %53, %52 : vector<32x1xf32>
    %55 = arith.mulf %54, %52 : vector<32x1xf32>
    %cst_19 = arith.constant 9.99999974E-6 : f32
    %56 = vector.broadcast %cst_19 : f32 to vector<32x1xf32>
    %57 = arith.addf %55, %56 : vector<32x1xf32>
    %58 = math.rsqrt %57 : vector<32x1xf32>
    %59 = arith.mulf %52, %58 : vector<32x1xf32>
    %60 = vector.broadcast %37 : vector<1x1xf32> to vector<32x1xf32>
    %61 = arith.mulf %60, %59 : vector<32x1xf32>
    %62 = arith.mulf %61, %59 : vector<32x1xf32>
    %cst_20 = arith.constant 9.99999974E-6 : f32
    %63 = vector.broadcast %cst_20 : f32 to vector<32x1xf32>
    %64 = arith.addf %62, %63 : vector<32x1xf32>
    %65 = math.rsqrt %64 : vector<32x1xf32>
    %66 = arith.mulf %59, %65 : vector<32x1xf32>
    %cst_21 = arith.constant 0.000000e+00 : f32
    %67 = vector.broadcast %cst_21 : f32 to vector<32x1xf32>
    %68 = arith.maximumf %66, %67 : vector<32x1xf32>
    %cst_22 = arith.constant 0.000000e+00 : f32
    %69 = vector.broadcast %cst_22 : f32 to vector<32x1xf32>
    %70 = arith.subf %69, %66 : vector<32x1xf32>
    %cst_23 = arith.constant 0.000000e+00 : f32
    %71 = vector.broadcast %cst_23 : f32 to vector<32x1xf32>
    %72 = arith.maximumf %70, %71 : vector<32x1xf32>
    %73 = vector.shape_cast %39 : vector<16x540xf32> to vector<2x8x540xf32>
    %cst_24 = arith.constant 0.000000e+00 : f32
    %74 = vector.broadcast %cst_24 : f32 to vector<2x8x540xf32>
    %75 = arith.maximumf %73, %74 : vector<2x8x540xf32>
    %cst_25 = arith.constant dense<0.000000e+00> : vector<2x540xf32>
    %76 = vector.multi_reduction <add>, %75, %cst_25 [1] : vector<2x8x540xf32> to vector<2x540xf32>
    %cst_26 = arith.constant 8.000000e+00 : f32
    %77 = vector.broadcast %cst_26 : f32 to vector<2x540xf32>
    %78 = arith.divf %76, %77 : vector<2x540xf32>
    %cst_27 = arith.constant dense<0.000000e+00> : vector<2x540xf32>
    %79 = vector.multi_reduction <add>, %73, %cst_27 [1] : vector<2x8x540xf32> to vector<2x540xf32>
    %cst_28 = arith.constant 8.000000e+00 : f32
    %80 = vector.broadcast %cst_28 : f32 to vector<2x540xf32>
    %81 = arith.divf %79, %80 : vector<2x540xf32>
    %82 = arith.subf %78, %81 : vector<2x540xf32>
    %83 = vector.shape_cast %68 : vector<32x1xf32> to vector<1x32x1xf32>
    %84 = vector.shape_cast %78 : vector<2x540xf32> to vector<2x1x540xf32>
    %85 = vector.broadcast %83 : vector<1x32x1xf32> to vector<2x32x540xf32>
    %86 = vector.broadcast %84 : vector<2x1x540xf32> to vector<2x32x540xf32>
    %87 = arith.mulf %85, %86 : vector<2x32x540xf32>
    %88 = vector.shape_cast %72 : vector<32x1xf32> to vector<1x32x1xf32>
    %89 = vector.shape_cast %82 : vector<2x540xf32> to vector<2x1x540xf32>
    %90 = vector.broadcast %88 : vector<1x32x1xf32> to vector<2x32x540xf32>
    %91 = vector.broadcast %89 : vector<2x1x540xf32> to vector<2x32x540xf32>
    %92 = arith.mulf %90, %91 : vector<2x32x540xf32>
    %93 = arith.addf %87, %92 : vector<2x32x540xf32>
    %c0_29 = arith.constant 0 : index
    %c0_30 = arith.constant 0 : index
    %c0_31 = arith.constant 0 : index
    %94 = vector.load %arg3[%c0_29, %c0_30, %c0_31] : memref<2x32x540xf32, #tpu.memory_space<vmem>>, vector<2x32x540xf32>
    tpu.vector_store %arg3[%c0_29, %c0_30, %c0_31], %93 {strides = array<i32>} : memref<2x32x540xf32, #tpu.memory_space<vmem>>, vector<2x32x540xf32>,
    return
  }
}

</mosaic_0001>

<bundles_post_ra>
// kernel: tpu_custom_call.1
= control target key start
LH: loop header
LB: loop body
LE: loop exit
PB: predicated region body
PF: predicated region fallthrough
CT: control target
= control target key end

     0   :  { %8 = vsyncpa [#allocation3], 0  ;;  %s1358_s0 = inlined_call_operand.hbm [shape: f32[16,540], index: 0, kind: input, shape index: {}]   ;;  %s1359_s1 = inlined_call_operand.vmem [shape: f32[1,32], index: 1, kind: input, shape index: {}]   ;;  %s1360_s2 = inlined_call_operand.hbm [shape: f32[32,32], index: 2, kind: input, shape index: {}]   ;;  %s1361_s3 = inlined_call_operand.hbm [shape: f32[2,32,540], index: 3, kind: output, shape index: {}]  }
   0x1   :  { %9 = vsyncpa [#allocation6], 0 }
   0x2   :  { %10 = vsyncpa [#allocation4], 0  ;;  %s841_s12 = smov [#allocation2]   ;;  %s769_s16 = scalar_lea.hbm %s1358_s0, 1280 }
   0x3   :  { %s16_s13 = sshll.u32 %s841_s12, 4  ;;  %p770_p0 = scmp.ne.s32.totalorder %s1358_s0, %s769_s16  ;;  %s17_s13 = int_to_ptr.vmem [resolvable:$true] %s16_s13 }
   0x4   :  { %p773_p1 = scmp.lt.u32.totalorder %s769_s16, %s1358_s0 }
   0x6   :  { %p775_p2 = pnand %p773_p1, %p770_p0 }
   0x8   :  { %778 = shalt.err (!%p775_p2)
}
   0x9   :  { %s779_s21 = scalar_lea.vmem %s17_s13, 1280  ;;  %p784_p4 = scmp.lt.s32.totalorder %s17_s13, %s17_s13 }
   0xa   :  { %p780_p3 = scmp.ne.s32.totalorder %s17_s13, %s779_s21  ;;  %p785_p5 = scmp.lt.s32.totalorder %s779_s21, %s779_s21 }
   0xc   :  { %p786_p6 = por %p785_p5, %p784_p4 }
   0xe   :  { %p787_p7 = pnand %p786_p6, %p780_p3 }
  0x10   :  { %790 = shalt.err (!%p787_p7)
}
  0x11   :  { %s842_s22 = smov 640   ;;  %s843_s23 = smov 40  }
  0x12   :  { %22 = dma.hbm_to_vmem [thread:$0]  %s1358_s0, 1280, %s17_s13, [#allocation3], %s842_s22, %s842_s22, %s843_s23  }
  0x13   :  { %s844_s26 = smov [#allocation5]   ;;  %s791_s30 = scalar_lea.hbm %s1360_s2, 512 }
  0x14   :  { %s30_s27 = sshll.u32 %s844_s26, 4  ;;  %p792_p8 = scmp.ne.s32.totalorder %s1360_s2, %s791_s30  ;;  %s31_s27 = int_to_ptr.vmem [resolvable:$true] %s30_s27 }
  0x15   :  { %p795_p9 = scmp.lt.u32.totalorder %s791_s30, %s1360_s2 }
  0x17   :  { %p797_p10 = pnand %p795_p9, %p792_p8 }
  0x19   :  { %800 = shalt.err (!%p797_p10)
}
  0x1a   :  { %s801_s8 = scalar_lea.vmem %s31_s27, 512  ;;  %p806_p12 = scmp.lt.s32.totalorder %s31_s27, %s31_s27 }
  0x1b   :  { %p802_p11 = scmp.ne.s32.totalorder %s31_s27, %s801_s8  ;;  %p807_p13 = scmp.lt.s32.totalorder %s801_s8, %s801_s8 }
  0x1d   :  { %p808_p0 = por %p807_p13, %p806_p12 }
  0x1f   :  { %p809_p1 = pnand %p808_p0, %p802_p11 }
  0x21   :  { %812 = shalt.err (!%p809_p1)
}
  0x22   :  { %s845_s0 = smov 128   ;;  %s846_s9 = smov 8  }
  0x23   :  { %36 = dma.hbm_to_vmem [thread:$0]  %s1360_s2, 512, %s31_s27, [#allocation6], %s845_s0, %s845_s0, %s846_s9  }
  0x24   :  { %835 = dma.done.wait [#allocation3], 1280  }
  0x25   :  { %836 = vsyncadd [#allocation3], 4294966016 }
  0x26   :  { %837 = dma.done.wait [#allocation6], 512  }
  0x27   :  { %838 = vsyncadd [#allocation6], 4294966784  ;;  %vm81_vm0 = vcmask 228352   ;;  %v895_v0 = vld [vmem:[#allocation2] sm:$0xff]  ;;  %v897_v1 = vld [vmem:[#allocation2 + $0x8] sm:$0xff]  ;;  %vm326_vm1 = vcmask 261120  }
  0x28   :  { %v899_v2 = vld [vmem:[#allocation2 + $0x10] sm:$0xff]  ;;  %v901_v3 = vld [vmem:[#allocation2 + $0x18] sm:$0xff]  ;;  %v903_v4 = vld [vmem:[#allocation2 + $0x20] sm:$0xff]  ;;  %v96_v6 = vmul.f32 %v895_v0, %v895_v0  ;;  %v97_v12 = vmul.f32 %v897_v1, %v897_v1 }
  0x29   :  { %v905_v5 = vld [vmem:[#allocation2 + $0x28] sm:$0xff]  ;;  %v909_v7 = vld [vmem:[#allocation2 + $0x30] sm:$0xff]  ;;  %v911_v8 = vld [vmem:[#allocation2 + $0x38] sm:$0xff]  ;;  %v82_v11 = vsel %vm81_vm0, %v903_v4, 0.0  ;;  %v98_v13 = vmul.f32 %v899_v2, %v899_v2  ;;  %v99_v28 = vmul.f32 %v901_v3, %v901_v3  ;;  %v100_v49 = vmul.f32 %v903_v4, %v903_v4 }
  0x2a   :  { %v913_v9 = vld [vmem:[#allocation2 + $0x40] sm:$0xff]  ;;  %v53_v10 = vadd.f32 %v905_v5, %v895_v0  ;;  %v923_v14 = vld [vmem:[#allocation2 + $0x48] sm:$0xff]  ;;  %v60_v15 = vadd.f32 %v909_v7, %v897_v1  ;;  %v67_v16 = vadd.f32 %v911_v8, %v899_v2  ;;  %v101_v18 = vmul.f32 %v905_v5, %v905_v5 }
  0x2b   :  { %v74_v17 = vadd.f32 %v913_v9, %v901_v3  ;;  %v83_v20 = vsel %vm81_vm0, %v923_v14, 0.0  ;;  %v102_v21 = vmul.f32 %v909_v7, %v909_v7  ;;  %v103_v22 = vmul.f32 %v911_v8, %v911_v8 }
  0x2c   :  { %v54_v19 = vrot.slane %v53_v10, 4  ;;  %v61_v23 = vrot.slane %v60_v15, 4  ;;  %v68_v24 = vrot.slane %v67_v16, 4  ;;  %v84_v26 = vadd.f32 %v83_v20, %v82_v11 }
  0x2d   :  { %v75_v25 = vrot.slane %v74_v17, 4  ;;  %v106_v29 = vadd.f32 %v101_v18, %v96_v6  ;;  %v113_v36 = vadd.f32 %v102_v21, %v97_v12  ;;  %v120_v37 = vadd.f32 %v103_v22, %v98_v13 }
  0x2e   :  { %v55_v27 = vadd.f32 %v54_v19, %v53_v10  ;;  %v62_v30 = vadd.f32 %v61_v23, %v60_v15  ;;  %v69_v31 = vadd.f32 %v68_v24, %v67_v16  ;;  %v85_v33 = vrot.slane %v84_v26, 4 }
  0x2f   :  { %v76_v32 = vadd.f32 %v75_v25, %v74_v17  ;;  %v107_v35 = vrot.slane %v106_v29, 4  ;;  %v114_v44 = vrot.slane %v113_v36, 4  ;;  %v121_v45 = vrot.slane %v120_v37, 4 }
  0x30   :  { %v56_v34 = vrot.slane %v55_v27, 2  ;;  %v63_v38 = vrot.slane %v62_v30, 2  ;;  %v70_v39 = vrot.slane %v69_v31, 2  ;;  %v86_v41 = vadd.f32 %v85_v33, %v84_v26 }
  0x31   :  { %v77_v40 = vrot.slane %v76_v32, 2  ;;  %v108_v43 = vadd.f32 %v107_v35, %v106_v29  ;;  %v115_v52 = vadd.f32 %v114_v44, %v113_v36  ;;  %v122_v53 = vadd.f32 %v121_v45, %v120_v37 }
  0x32   :  { %v57_v42 = vadd.f32 %v56_v34, %v55_v27  ;;  %v64_v46 = vadd.f32 %v63_v38, %v62_v30  ;;  %v71_v47 = vadd.f32 %v70_v39, %v69_v31  ;;  %v87_v48 = vrot.slane %v86_v41, 2 }
  0x33   :  { %v109_v51 = vrot.slane %v108_v43, 2  ;;  %v78_v56 = vadd.f32 %v77_v40, %v76_v32  ;;  %v104_v57 = vmul.f32 %v913_v9, %v913_v9  ;;  %v116_v60 = vrot.slane %v115_v52, 2 }
  0x34   :  { %v58_v50 = vrot.slane %v57_v42, 1  ;;  %v65_v54 = vrot.slane %v64_v46, 1  ;;  %v72_v55 = vrot.slane %v71_v47, 1  ;;  %v123_v61 = vrot.slane %v122_v53, 2 }
  0x35   :  { %v110_v59 = vadd.f32 %v109_v51, %v108_v43  ;;  %v88_v6 = vadd.f32 %v87_v48, %v86_v41  ;;  %v105_v10 = vmul.f32 %v923_v14, %v923_v14  ;;  %v117_v13 = vadd.f32 %v116_v60, %v115_v52 }
  0x36   :  { %v59_v58 = vadd.f32 %v58_v50, %v57_v42  ;;  %v66_v62 = vadd.f32 %v65_v54, %v64_v46  ;;  %v73_v63 = vadd.f32 %v72_v55, %v71_v47  ;;  %v124_v15 = vadd.f32 %v123_v61, %v122_v53 }
  0x37   :  { %v111_v12 = vrot.slane %v110_v59, 1  ;;  %v79_v16 = vrot.slane %v78_v56, 1  ;;  %v118_v20 = vrot.slane %v117_v13, 1  ;;  %v127_v22 = vadd.f32 %v104_v57, %v99_v28 }
  0x38   :  { %v947_v11 = vmul.f32 0.0625, %v59_v58  ;;  %v949_v17 = vmul.f32 0.0625, %v66_v62  ;;  %v951_v18 = vmul.f32 0.0625, %v73_v63  ;;  %v125_v21 = vrot.slane %v124_v15, 1 }
  0x39   :  { %v112_v19 = vadd.f32 %v111_v12, %v110_v59  ;;  %v89_v23 = vrot.slane %v88_v6, 1  ;;  %v134_v24 = vsel %vm81_vm0, %v100_v49, 0.0  ;;  %v135_v25 = vsel %vm81_vm0, %v105_v10, 0.0 }
  0x3a   :  { %v148_v26 = vmul.f32 %v947_v11, %v947_v11  ;;  %v119_v27 = vadd.f32 %v118_v20, %v117_v13  ;;  %v126_v29 = vadd.f32 %v125_v21, %v124_v15  ;;  %v128_v30 = vrot.slane %v127_v22, 4 }
  0x3b   :  { %v136_v31 = vadd.f32 %v135_v25, %v134_v24  ;;  %v80_v32 = vadd.f32 %v79_v16, %v78_v56  ;;  %v143_v33 = vmul.f32 0.0625, %v112_v19  ;;  %v149_v34 = vmul.f32 %v949_v17, %v949_v17 }
  0x3c   :  { %v150_v28 = vmul.f32 %v951_v18, %v951_v18  ;;  %v129_v35 = vadd.f32 %v128_v30, %v127_v22  ;;  %v144_v37 = vmul.f32 0.0625, %v119_v27  ;;  %v145_v38 = vmul.f32 0.0625, %v126_v29 }
  0x3d   :  { %v137_v36 = vrot.slane %v136_v31, 4  ;;  %v90_v39 = vadd.f32 %v89_v23, %v88_v6  ;;  %v153_v40 = vsub.f32 %v143_v33, %v148_v26  ;;  %v961_v45 = vmul.f32 0.0625, %v80_v32 }
  0x3e   :  { %v130_v41 = vrot.slane %v129_v35, 2  ;;  %v154_v43 = vsub.f32 %v144_v37, %v149_v34  ;;  %v155_v44 = vsub.f32 %v145_v38, %v150_v28  ;;  %v163_v13 = vsub.f32 %v895_v0, %v947_v11 }
  0x3f   :  { %v138_v42 = vadd.f32 %v137_v36, %v136_v31  ;;  %v158_v46 = vmax.f32 %v153_v40, 0.0  ;;  %v963_v51 = vmul.f32 0.0625, %v90_v39  ;;  %v151_v59 = vmul.f32 %v961_v45, %v961_v45 }
  0x40   :  { %v131_v47 = vadd.f32 %v130_v41, %v129_v35  ;;  %v159_v49 = vmax.f32 %v154_v43, 0.0  ;;  %v160_v50 = vmax.f32 %v155_v44, 0.0  ;;  %v168_v15 = vsub.f32 %v905_v5, %v947_v11 }
  0x41   :  { %v139_v48 = vrot.slane %v138_v42, 2  ;;  %v173_v54 = vadd.f32 1e-05, %v158_v46  ;;  %v152_v62 = vmul.f32 %v963_v51, %v963_v51  ;;  %v164_v19 = vsub.f32 %v897_v1, %v949_v17 }
  0x42   :  { %v132_v52 = vrot.slane %v131_v47, 1  ;;  %v174_v55 = vadd.f32 1e-05, %v159_v49  ;;  %v175_v56 = vadd.f32 1e-05, %v160_v50  ;;  %v169_v20 = vsub.f32 %v909_v7, %v949_v17 }
  0x43   :  { %v140_v53 = vadd.f32 %v139_v48, %v138_v42  ;;  %741 = vrsqrt.f32 %v173_v54  ;;  %v165_v22 = vsub.f32 %v899_v2, %v951_v18  ;;  %v170_v23 = vsub.f32 %v911_v8, %v951_v18 }
  0x44   :  { %v133_v57 = vadd.f32 %v132_v52, %v131_v47  ;;  %743 = vrsqrt.f32 %v174_v55  ;;  %v166_v35 = vsub.f32 %v901_v3, %v961_v45  ;;  %v171_v39 = vsub.f32 %v913_v9, %v961_v45 }
  0x45   :  { %v141_v58 = vrot.slane %v140_v53, 1  ;;  %745 = vrsqrt.f32 %v175_v56  ;;  %v167_v43 = vsub.f32 %v903_v4, %v963_v51  ;;  %v172_v48 = vsub.f32 %v923_v14, %v963_v51 }
  0x46   :  { %v146_v61 = vmul.f32 0.0625, %v133_v57 }
  0x47   :  { %v142_v60 = vadd.f32 %v141_v58, %v140_v53 }
  0x48   :  { %v156_v6 = vsub.f32 %v146_v61, %v151_v59 }
  0x49   :  { %v147_v63 = vmul.f32 0.0625, %v142_v60 }
  0x4a   :  { %v161_v12 = vmax.f32 %v156_v6, 0.0 }
  0x4b   :  { %v157_v10 = vsub.f32 %v147_v63, %v152_v62 }
  0x4c   :  { %v176_v21 = vadd.f32 1e-05, %v161_v12 }
  0x4d   :  { %v162_v16 = vmax.f32 %v157_v10, 0.0  ;;  %v742_v24 = vpop.eup %741 }
  0x4e   :  { %747 = vrsqrt.f32 %v176_v21  ;;  %v744_v0 = vpop.eup %743  ;;  %v981_v26 = vmul.f32 %v742_v24, %v163_v13  ;;  %v983_v5 = vmul.f32 %v742_v24, %v168_v15 }
  0x4f   :  { %v177_v25 = vadd.f32 1e-05, %v162_v16  ;;  %v746_v11 = vpop.eup %745  ;;  %v985_v1 = vmul.f32 %v744_v0, %v164_v19  ;;  %v987_v7 = vmul.f32 %v744_v0, %v169_v20 }
  0x50   :  { %v989_v17 = vmul.f32 %v746_v11, %v165_v22  ;;  %v991_v2 = vmul.f32 %v746_v11, %v170_v23  ;;  %v193_v8 = vadd.f32 %v983_v5, %v981_v26  ;;  %v230_v18 = vmul.f32 %v981_v26, %v981_v26 }
  0x51   :  { %749 = vrsqrt.f32 %v177_v25  ;;  %v200_v27 = vadd.f32 %v987_v7, %v985_v1  ;;  %v231_v29 = vmul.f32 %v985_v1, %v985_v1  ;;  %v235_v30 = vmul.f32 %v983_v5, %v983_v5 }
  0x52   :  { %v236_v31 = vmul.f32 %v987_v7, %v987_v7  ;;  %v194_v32 = vrot.slane %v193_v8, 4  ;;  %v207_v33 = vadd.f32 %v991_v2, %v989_v17  ;;  %v232_v34 = vmul.f32 %v989_v17, %v989_v17 }
  0x53   :  { %v237_v28 = vmul.f32 %v991_v2, %v991_v2  ;;  %v201_v36 = vrot.slane %v200_v27, 4  ;;  %v240_v37 = vadd.f32 %v235_v30, %v230_v18 }
  0x54   :  { %v247_v38 = vadd.f32 %v236_v31, %v231_v29  ;;  %v195_v40 = vadd.f32 %v194_v32, %v193_v8  ;;  %v208_v41 = vrot.slane %v207_v33, 4 }
  0x55   :  { %v254_v42 = vadd.f32 %v237_v28, %v232_v34  ;;  %v202_v44 = vadd.f32 %v201_v36, %v200_v27  ;;  %v241_v46 = vrot.slane %v240_v37, 4 }
  0x56   :  { %v248_v47 = vrot.slane %v247_v38, 4  ;;  %v196_v49 = vrot.slane %v195_v40, 2  ;;  %v209_v3 = vadd.f32 %v208_v41, %v207_v33 }
  0x57   :  { %v255_v50 = vrot.slane %v254_v42, 4  ;;  %v203_v53 = vrot.slane %v202_v44, 2  ;;  %v242_v54 = vadd.f32 %v241_v46, %v240_v37 }
  0x58   :  { %v748_v52 = vpop.eup %747  ;;  %v249_v55 = vadd.f32 %v248_v47, %v247_v38  ;;  %v197_v56 = vadd.f32 %v196_v49, %v195_v40  ;;  %v210_v57 = vrot.slane %v209_v3, 2 }
  0x59   :  { %v1019_v9 = vmul.f32 %v748_v52, %v166_v35  ;;  %v1021_v45 = vmul.f32 %v748_v52, %v171_v39  ;;  %v204_v58 = vadd.f32 %v203_v53, %v202_v44  ;;  %v243_v59 = vrot.slane %v242_v54, 2 }
  0x5a   :  { %v250_v60 = vrot.slane %v249_v55, 2  ;;  %v256_v61 = vadd.f32 %v255_v50, %v254_v42  ;;  %v198_v51 = vrot.slane %v197_v56, 1  ;;  %v211_v63 = vadd.f32 %v210_v57, %v209_v3 }
  0x5b   :  { %v750_v4 = vpop.eup %749  ;;  %v205_v6 = vrot.slane %v204_v58, 1  ;;  %v214_v10 = vadd.f32 %v1021_v45, %v1019_v9  ;;  %v233_v12 = vmul.f32 %v1019_v9, %v1019_v9  ;;  %v238_v13 = vmul.f32 %v1021_v45, %v1021_v45 }
  0x5c   :  { %v1023_v62 = vmul.f32 %v750_v4, %v167_v43  ;;  %v1025_v14 = vmul.f32 %v750_v4, %v172_v48  ;;  %v199_v15 = vadd.f32 %v198_v51, %v197_v56  ;;  %v212_v16 = vrot.slane %v211_v63, 1 }
  0x5d   :  { %v206_v21 = vadd.f32 %v205_v6, %v204_v58  ;;  %v215_v22 = vrot.slane %v214_v10, 4  ;;  %v244_v0 = vadd.f32 %v243_v59, %v242_v54  ;;  %v251_v11 = vadd.f32 %v250_v60, %v249_v55 }
  0x5e   :  { %v221_v19 = vsel %vm81_vm0, %v1023_v62, 0.0  ;;  %v222_v20 = vsel %vm81_vm0, %v1025_v14, 0.0  ;;  %v234_v24 = vmul.f32 %v1023_v62, %v1023_v62  ;;  %v239_v25 = vmul.f32 %v1025_v14, %v1025_v14 }
  0x5f   :  { %v223_v23 = vadd.f32 %v222_v20, %v221_v19  ;;  %v213_v8 = vadd.f32 %v212_v16, %v211_v63  ;;  %v216_v18 = vadd.f32 %v215_v22, %v214_v10  ;;  %v257_v29 = vrot.slane %v256_v61, 2 }
  0x60   :  { %v245_v30 = vrot.slane %v244_v0, 1  ;;  %v252_v31 = vrot.slane %v251_v11, 1  ;;  %v261_v32 = vadd.f32 %v238_v13, %v233_v12  ;;  %v268_v33 = vsel %vm81_vm0, %v234_v24, 0.0 }
  0x61   :  { %v224_v27 = vrot.slane %v223_v23, 4  ;;  %v217_v34 = vrot.slane %v216_v18, 2  ;;  %v277_v35 = vadd.f32 %v206_v21, %v199_v15  ;;  %v258_v36 = vadd.f32 %v257_v29, %v256_v61 }
  0x62   :  { %v246_v37 = vadd.f32 %v245_v30, %v244_v0  ;;  %v253_v38 = vadd.f32 %v252_v31, %v251_v11  ;;  %v262_v39 = vrot.slane %v261_v32, 4  ;;  %v269_v40 = vsel %vm81_vm0, %v239_v25, 0.0  ;;  %v306_v0 = vld [vmem:[%s1359_s1] sm:$0x1]  ;;  %s847_s1 = smov [#allocation7]  }
  0x63   :  { %v225_v28 = vadd.f32 %v224_v27, %v223_v23  ;;  %v218_v41 = vadd.f32 %v217_v34, %v216_v18  ;;  %v259_v43 = vrot.slane %v258_v36, 1  ;;  %v270_v44 = vadd.f32 %v269_v40, %v268_v33  ;;  %v309_v34 = vld [vmem:[#allocation5 + $0x10] sm:$0xff]  ;;  %s721_s13 = sshll.u32 %s847_s1, 4  ;;  %s722_s13 = int_to_ptr.vmem [resolvable:$true] %s721_s13 }
  0x64   :  { %v263_v46 = vadd.f32 %v262_v39, %v261_v32  ;;  %v278_v49 = vadd.f32 %v277_v35, %v213_v8  ;;  %v285_v53 = vadd.f32 %v253_v38, %v246_v37  ;;  %v317_v29 = vlaneseq  ;;  %s813_s14 = scalar_lea.vmem %s722_s13, 5120  ;;  %p818_p3 = scmp.lt.s32.totalorder %s722_s13, %s722_s13 }
  0x65   :  { %v226_v42 = vrot.slane %v225_v28, 2  ;;  %v219_v47 = vrot.slane %v218_v41, 1  ;;  %v271_v3 = vrot.slane %v270_v44, 4  ;;  %v260_v50 = vadd.f32 %v259_v43, %v258_v36  ;;  %v308_v36 = vld [vmem:[#allocation5 + $0x8] sm:$0xff]  ;;  %p814_p2 = scmp.ne.s32.totalorder %s722_s13, %s813_s14  ;;  %p819_p4 = scmp.lt.s32.totalorder %s813_s14, %s813_s14 }
  0x66   :  { %v264_v52 = vrot.slane %v263_v46, 2  ;;  %v318_v30 = vshrl.u32 %v317_v29, 7 }
  0x67   :  { %v227_v48 = vadd.f32 %v226_v42, %v225_v28  ;;  %v220_v54 = vadd.f32 %v219_v47, %v218_v41  ;;  %v272_v56 = vadd.f32 %v271_v3, %v270_v44  ;;  %v286_v61 = vadd.f32 %v285_v53, %v260_v50  ;;  %v307_v28 = vld [vmem:[#allocation5] sm:$0xff]  ;;  %v310_v42 = vld [vmem:[#allocation5 + $0x18] sm:$0xff]  ;;  %p820_p5 = por %p819_p4, %p818_p3 }
  0x68   :  { %v265_v57 = vadd.f32 %v264_v52, %v263_v46  ;;  %v319_v31 = vsub.s32 0, %v318_v30 }
  0x69   :  { %v228_v55 = vrot.slane %v227_v48, 1  ;;  %v279_v58 = vadd.f32 %v278_v49, %v220_v54  ;;  %v273_v59 = vrot.slane %v272_v56, 2  ;;  %p821_p6 = pnand %p820_p5, %p814_p2 }
  0x6a   :  { %v266_v60 = vrot.slane %v265_v57, 1 }
  0x6b   :  { %v229_v4 = vadd.f32 %v228_v55, %v227_v48  ;;  %v274_v63 = vadd.f32 %v273_v59, %v272_v56 }
  0x6c   :  { %v267_v10 = vadd.f32 %v266_v60, %v265_v57 }
  0x6d   :  { %v280_v51 = vsel %vm81_vm0, %v229_v4, 0.0  ;;  %v275_v12 = vrot.slane %v274_v63, 1 }
  0x6e   :  { %v281_v6 = vadd.f32 %v280_v51, %v279_v58  ;;  %v287_v13 = vadd.f32 %v286_v61, %v267_v10 }
  0x6f   :  { %v276_v15 = vadd.f32 %v275_v12, %v274_v63 }
  0x70   :  { %282 = vadd.xlane.f32.xlu0 %v281_v6 }
  0x71   :  { %v288_v16 = vsel %vm81_vm0, %v276_v15, 0.0 }
  0x72   :  { %v289_v19 = vadd.f32 %v288_v16, %v287_v13 }
  0x74   :  { %290 = vadd.xlane.f32.xlu0 %v289_v19 }
  0xfd   :  { %v283_v20 = vpop.xlane.xlu0 %282 }
  0xfe   :  { %v1045_v21 = vmul.f32 0.00011574074, %v283_v20 }
 0x100   :  { %v293_v23 = vmul.f32 %v1045_v21, %v1045_v21  ;;  %v1057_v47 = vsub.f32 %v981_v26, %v1045_v21  ;;  %v1061_v48 = vsub.f32 %v985_v1, %v1045_v21  ;;  %v1065_v49 = vsub.f32 %v989_v17, %v1045_v21 }
 0x101   :  { %v291_v22 = vpop.xlane.xlu0 %290  ;;  %v300_v3 = vsub.f32 %v1023_v62, %v1045_v21  ;;  %v1071_v50 = vsub.f32 %v1019_v9, %v1045_v21  ;;  %v1075_v52 = vsub.f32 %v983_v5, %v1045_v21  ;;  %v1079_v26 = vsub.f32 %v987_v7, %v1045_v21 }
 0x102   :  { %v292_v24 = vmul.f32 0.00011574074, %v291_v22  ;;  %v1083_v1 = vsub.f32 %v991_v2, %v1045_v21  ;;  %v391_v17 = vmax.f32 %v1057_v47, 0.0  ;;  %v392_v62 = vmax.f32 %v1061_v48, 0.0 }
 0x103   :  { %v393_v53 = vmax.f32 %v1065_v49, 0.0  ;;  %v395_v9 = vmax.f32 %v300_v3, 0.0  ;;  %v394_v54 = vmax.f32 %v1071_v50, 0.0  ;;  %v396_v5 = vmax.f32 %v1075_v52, 0.0 }
 0x104   :  { %v294_v25 = vsub.f32 %v292_v24, %v293_v23  ;;  %v397_v55 = vmax.f32 %v1079_v26, 0.0  ;;  %v398_v7 = vmax.f32 %v1083_v1, 0.0  ;;  %v401_v56 = vrot.slane %v391_v17, 4 }
 0x105   :  { %v407_v57 = vrot.slane %v392_v62, 4  ;;  %v413_v4 = vrot.slane %v393_v53, 4  ;;  %v425_v2 = vsel %vm81_vm0, %v395_v9, 0.0  ;;  %v419_v58 = vrot.slane %v394_v54, 4 }
 0x106   :  { %v1052_v11 = vmax.f32 %v294_v25, 0.0  ;;  %v305_v59 = vsub.f32 %v1025_v14, %v1045_v21  ;;  %v432_v60 = vrot.slane %v396_v5, 4  ;;  %v438_v61 = vrot.slane %v397_v55, 4 }
 0x107   :  { %v444_v51 = vrot.slane %v398_v7, 4  ;;  %v402_v63 = vadd.f32 %v401_v56, %v391_v17  ;;  %v426_v6 = vrot.slane %v425_v2, 4  ;;  %v408_v10 = vadd.f32 %v407_v57, %v392_v62 }
 0x108   :  { %v311_v8 = vmul.f32 %v306_v0, %v1052_v11  ;;  %v414_v12 = vadd.f32 %v413_v4, %v393_v53  ;;  %v420_v13 = vadd.f32 %v419_v58, %v394_v54  ;;  %v400_v15 = vmax.f32 %v305_v59, 0.0 }
 0x109   :  { %v433_v16 = vadd.f32 %v432_v60, %v396_v5  ;;  %v439_v19 = vadd.f32 %v438_v61, %v397_v55  ;;  %v445_v20 = vadd.f32 %v444_v51, %v398_v7  ;;  %v403_v22 = vrot.slane %v402_v63, 2 }
 0x10a   :  { %v312_v18 = vmul.f32 %v311_v8, %v306_v0  ;;  %v427_v23 = vadd.f32 %v426_v6, %v425_v2  ;;  %v1097_v24 = vsub.f32 %v1021_v45, %v1045_v21  ;;  %v409_v25 = vrot.slane %v408_v10, 2 }
 0x10b   :  { %v415_v14 = vrot.slane %v414_v12, 2  ;;  %v434_v8 = vrot.slane %v433_v16, 2  ;;  %v456_v29 = vsel %vm81_vm0, %v400_v15, 0.0  ;;  %v1100_v30 = vadd.f32 %v403_v22, %v402_v63 }
 0x10c   :  { %v313_v27 = vadd.f32 1e-05, %v312_v18  ;;  %v440_v18 = vrot.slane %v439_v19, 2  ;;  %v457_v21 = vrot.slane %v456_v29, 4  ;;  %v474_v62 = vrot.slane %v1057_v47, 4 }
 0x10d   :  { %v480_v7 = vrot.slane %v1061_v48, 4  ;;  %v486_v56 = vrot.slane %v1065_v49, 4  ;;  %v492_v6 = vrot.slane %v1071_v50, 4 }
 0x10e   :  { %751 = vrsqrt.f32 %v313_v27  ;;  %v446_v27 = vrot.slane %v445_v20, 2  ;;  %v458_v9 = vadd.f32 %v457_v21, %v456_v29  ;;  %v475_v63 = vadd.f32 %v474_v62, %v1057_v47 }
 0x10f   :  { %v511_v47 = vrot.slane %v1079_v26, 4 }
 0x118   :  { %v752_v32 = vpop.eup %751 }
 0x119   :  { %v315_v33 = vmul.f32 %v752_v32, %v306_v0  ;;  %v421_v0 = vrot.slane %v420_v13, 2  ;;  %v498_v32 = vsel %vm81_vm0, %v300_v3, 0.0 }
 0x11b   :  { %v320_v35 = vrot.slane %v315_v33, %v319_v31  ;;  %v428_v31 = vrot.slane %v427_v23, 2  ;;  %v399_v33 = vmax.f32 %v1097_v24, 0.0  ;;  %v1108_v45 = vadd.f32 %v421_v0, %v420_v13 }
 0x11c   :  { %v505_v13 = vrot.slane %v1075_v52, 4  ;;  %v493_v0 = vadd.f32 %v492_v6, %v1071_v50 }
 0x11d   :  { %v324_v37 = vmul.f32 %v320_v35, %v309_v34  ;;  %v322_v38 = vmul.f32 %v320_v35, %v307_v28  ;;  %v323_v41 = vmul.f32 %v320_v35, %v308_v36  ;;  %v325_v44 = vmul.f32 %v320_v35, %v310_v42 }
 0x11e   :  { %v1104_v34 = vadd.f32 %v409_v25, %v408_v10  ;;  %v1106_v28 = vadd.f32 %v415_v14, %v414_v12  ;;  %v1110_v35 = vadd.f32 %v434_v8, %v433_v16  ;;  %v1112_v36 = vadd.f32 %v440_v18, %v439_v19 }
 0x11f   :  { %v333_v39 = vsel %vm326_vm1, %v324_v37, 0.0  ;;  %v327_v40 = vsel %vm326_vm1, %v322_v38, 0.0  ;;  %v330_v43 = vsel %vm326_vm1, %v323_v41, 0.0  ;;  %v336_v46 = vsel %vm326_vm1, %v325_v44, 0.0 }
 0x120   :  { %334 = vadd.xlane.f32.xlu0 %v333_v39  ;;  %328 = vadd.xlane.f32.xlu1 %v327_v40  ;;  %v1114_v37 = vadd.f32 %v446_v27, %v445_v20  ;;  %v499_v38 = vrot.slane %v498_v32, 4  ;;  %v405_v41 = vrot.slane %v1100_v30, 1  ;;  %v429_v42 = vadd.f32 %v428_v31, %v427_v23 }
 0x121   :  { %v417_v3 = vrot.slane %v1106_v28, 1  ;;  %v450_v17 = vrot.slane %v399_v33, 4  ;;  %v423_v53 = vrot.slane %v1108_v45, 1  ;;  %v436_v55 = vrot.slane %v1110_v35, 1 }
 0x122   :  { %v500_v57 = vadd.f32 %v499_v38, %v498_v32  ;;  %v430_v2 = vrot.slane %v429_v42, 1  ;;  %v529_v10 = vsel %vm81_vm0, %v305_v59, 0.0  ;;  %v459_v12 = vrot.slane %v458_v9, 2 }
 0x123   :  { %v451_v51 = vadd.f32 %v450_v17, %v399_v33  ;;  %v481_v16 = vadd.f32 %v480_v7, %v1061_v48  ;;  %v487_v19 = vadd.f32 %v486_v56, %v1065_v49  ;;  %v530_v23 = vrot.slane %v529_v10, 4 }
 0x124   :  { %331 = vadd.xlane.f32.xlu1 %v330_v43  ;;  %v501_v20 = vrot.slane %v500_v57, 2  ;;  %v517_v8 = vrot.slane %v1083_v1, 4  ;;  %v523_v48 = vrot.slane %v1097_v24, 4  ;;  %v460_v18 = vadd.f32 %v459_v12, %v458_v9 }
 0x125   :  { %v452_v14 = vrot.slane %v451_v51, 2  ;;  %v506_v49 = vadd.f32 %v505_v13, %v1075_v52  ;;  %v431_v29 = vadd.f32 %v430_v2, %v429_v42  ;;  %v476_v31 = vrot.slane %v475_v63, 2 }
 0x126   :  { %v482_v32 = vrot.slane %v481_v16, 2  ;;  %v502_v33 = vadd.f32 %v501_v20, %v500_v57  ;;  %v488_v21 = vrot.slane %v487_v19, 2  ;;  %v512_v38 = vadd.f32 %v511_v47, %v1079_v26 }
 0x127   :  { %v442_v50 = vrot.slane %v1112_v36, 1  ;;  %v494_v17 = vrot.slane %v493_v0, 2  ;;  %v518_v62 = vadd.f32 %v517_v8, %v1083_v1  ;;  %v524_v9 = vadd.f32 %v523_v48, %v1097_v24 }
 0x128   :  { %337 = vadd.xlane.f32.xlu1 %v336_v46  ;;  %v411_v46 = vrot.slane %v1104_v34, 1  ;;  %v453_v52 = vadd.f32 %v452_v14, %v451_v51  ;;  %v448_v42 = vrot.slane %v1114_v37, 1  ;;  %v477_v7 = vadd.f32 %v476_v31, %v475_v63 }
 0x129   :  { %v483_v56 = vadd.f32 %v482_v32, %v481_v16  ;;  %v503_v57 = vrot.slane %v502_v33, 1  ;;  %v1160_v26 = vmul.f32 0.125, %v431_v29  ;;  %v519_v1 = vrot.slane %v518_v62, 2 }
 0x12a   :  { %v525_v12 = vrot.slane %v524_v9, 2  ;;  %v454_v51 = vrot.slane %v453_v52, 1  ;;  %v478_v16 = vrot.slane %v477_v7, 1  ;;  %v406_v32 = vadd.f32 %v405_v41, %v1100_v30 }
 0x12b   :  { %v484_v20 = vrot.slane %v483_v56, 1  ;;  %v504_v47 = vadd.f32 %v503_v57, %v502_v33  ;;  %v520_v8 = vadd.f32 %v519_v1, %v518_v62  ;;  %v412_v33 = vadd.f32 %v411_v46, %v1104_v34 }
 0x12c   :  { %v526_v48 = vadd.f32 %v525_v12, %v524_v9  ;;  %v424_v30 = vadd.f32 %v423_v53, %v1108_v45  ;;  %v437_v34 = vadd.f32 %v436_v55, %v1110_v35  ;;  %v449_v46 = vadd.f32 %v448_v42, %v1114_v37 }
 0x12d   :  { %v540_v31 = vmul.f32 0.125, %v504_v47  ;;  %v1203_v57 = vmul.f32 0.125, %v406_v32  ;;  %v1205_v45 = vmul.f32 0.125, %v412_v33  ;;  %v479_v35 = vadd.f32 %v478_v16, %v477_v7 }
 0x12e   :  { %v527_v9 = vrot.slane %v526_v48, 1  ;;  %v485_v55 = vadd.f32 %v484_v20, %v483_v56 }
 0x12f   :  { %v536_v56 = vmul.f32 0.125, %v479_v35 }
 0x1ad   :  { %v1116_v39 = vpop.xlane.xlu0 %334  ;;  %v1118_v40 = vpop.xlane.xlu1 %328 }
 0x1ae   :  { %v341_v43 = vmul.f32 %v1116_v39, %v1052_v11  ;;  %v339_v44 = vmul.f32 %v1118_v40, %v1052_v11 }
 0x1b0   :  { %v345_v54 = vmul.f32 %v341_v43, %v1116_v39  ;;  %v343_v5 = vmul.f32 %v339_v44, %v1118_v40  ;;  %v531_v43 = vadd.f32 %v530_v23, %v529_v10  ;;  %v495_v10 = vadd.f32 %v494_v17, %v493_v0 }
 0x1b1   :  { %v1134_v4 = vpop.xlane.xlu1 %331  ;;  %v418_v17 = vadd.f32 %v417_v3, %v1106_v28  ;;  %v443_v28 = vadd.f32 %v442_v50, %v1112_v36  ;;  %v455_v3 = vadd.f32 %v454_v51, %v453_v52  ;;  %v1210_v50 = vmul.f32 0.125, %v424_v30 }
 0x1b2   :  { %v349_v58 = vadd.f32 1e-05, %v345_v54  ;;  %v347_v60 = vadd.f32 1e-05, %v343_v5  ;;  %v340_v61 = vmul.f32 %v1134_v4, %v1052_v11  ;;  %v461_v54 = vrot.slane %v460_v18, 1 }
 0x1b3   :  { %v507_v5 = vrot.slane %v506_v49, 2  ;;  %v496_v0 = vrot.slane %v495_v10, 1  ;;  %v1207_v53 = vmul.f32 0.125, %v418_v17  ;;  %v1212_v52 = vmul.f32 0.125, %v437_v34 }
 0x1b4   :  { %753 = vrsqrt.f32 %v349_v58  ;;  %v344_v15 = vmul.f32 %v340_v61, %v1134_v4  ;;  %v489_v58 = vadd.f32 %v488_v21, %v487_v19  ;;  %v532_v61 = vrot.slane %v531_v43, 2 }
 0x1b5   :  { %755 = vrsqrt.f32 %v347_v60  ;;  %v1145_v22 = vpop.xlane.xlu1 %337  ;;  %v513_v60 = vrot.slane %v512_v38, 2  ;;  %v462_v13 = vadd.f32 %v461_v54, %v460_v18  ;;  %v1215_v12 = vmul.f32 0.125, %v443_v28 }
 0x1b6   :  { %v348_v25 = vadd.f32 1e-05, %v344_v15  ;;  %v342_v59 = vmul.f32 %v1145_v22, %v1052_v11  ;;  %v508_v15 = vadd.f32 %v507_v5, %v506_v49  ;;  %v533_v14 = vadd.f32 %v532_v61, %v531_v43 }
 0x1b7   :  { %v1217_v51 = vmul.f32 0.125, %v449_v46  ;;  %v1219_v7 = vmul.f32 0.125, %v455_v3 }
 0x1b8   :  { %757 = vrsqrt.f32 %v348_v25  ;;  %v346_v27 = vmul.f32 %v342_v59, %v1145_v22  ;;  %v490_v25 = vrot.slane %v489_v58, 1  ;;  %v514_v59 = vadd.f32 %v513_v60, %v512_v38 }
 0x1b9   :  { %v509_v49 = vrot.slane %v508_v15, 1  ;;  %v497_v60 = vadd.f32 %v496_v0, %v495_v10 }
 0x1ba   :  { %v350_v44 = vadd.f32 1e-05, %v346_v27  ;;  %v515_v43 = vrot.slane %v514_v59, 1 }
 0x1bb   :  { %v510_v61 = vadd.f32 %v509_v49, %v508_v15 }
 0x1bc   :  { %759 = vrsqrt.f32 %v350_v44  ;;  %v534_v44 = vrot.slane %v533_v14, 1 }
 0x1bd   :  { %v541_v15 = vmul.f32 0.125, %v510_v61 }
 0x1be   :  { %v754_v2 = vpop.eup %753  ;;  %v535_v5 = vadd.f32 %v534_v44, %v533_v14 }
 0x1bf   :  { %v756_v6 = vpop.eup %755  ;;  %v1163_v24 = vmul.f32 %v754_v2, %v1116_v39  ;;  %v491_v2 = vadd.f32 %v490_v25, %v489_v58  ;;  %v537_v58 = vmul.f32 0.125, %v485_v55  ;;  %v1222_v25 = vsub.f32 %v1203_v57, %v536_v56 }
 0x1c0   :  { %v1166_v63 = vmul.f32 %v756_v6, %v1118_v40  ;;  %v1173_v40 = vmul.f32 0.125, %v462_v13  ;;  %v516_v6 = vadd.f32 %v515_v43, %v514_v59  ;;  %v545_v1 = vmul.f32 0.125, %v535_v5 }
 0x1c1   :  { %v361_v19 = vmul.f32 %v1163_v24, %v1052_v11  ;;  %v538_v10 = vmul.f32 0.125, %v491_v2  ;;  %v539_v13 = vmul.f32 0.125, %v497_v60  ;;  %v1225_v59 = vsub.f32 %v1205_v45, %v537_v58 }
 0x1c2   :  { %v758_v23 = vpop.eup %757  ;;  %v359_v39 = vmul.f32 %v1166_v63, %v1052_v11  ;;  %v542_v16 = vmul.f32 0.125, %v516_v6  ;;  %v1238_v49 = vsub.f32 %v1212_v52, %v541_v15 }
 0x1c3   :  { %v365_v18 = vmul.f32 %v361_v19, %v1163_v24  ;;  %v1177_v29 = vmul.f32 %v758_v23, %v1134_v4  ;;  %v521_v4 = vrot.slane %v520_v8, 1  ;;  %v1228_v0 = vsub.f32 %v1207_v53, %v538_v10 }
 0x1c4   :  { %v363_v27 = vmul.f32 %v359_v39, %v1166_v63 }
 0x1c5   :  { %v369_v21 = vadd.f32 1e-05, %v365_v18  ;;  %v360_v41 = vmul.f32 %v1177_v29, %v1052_v11  ;;  %v522_v36 = vadd.f32 %v521_v4, %v520_v8  ;;  %v1231_v8 = vsub.f32 %v1210_v50, %v539_v13 }
 0x1c6   :  { %v760_v38 = vpop.eup %759  ;;  %v367_v62 = vadd.f32 1e-05, %v363_v27  ;;  %v1241_v27 = vsub.f32 %v1215_v12, %v542_v16 }
 0x1c7   :  { %761 = vrsqrt.f32 %v369_v21  ;;  %v1189_v54 = vmul.f32 %v760_v38, %v1145_v22  ;;  %v364_v37 = vmul.f32 %v360_v41, %v1177_v29  ;;  %v543_v20 = vmul.f32 0.125, %v522_v36 }
 0x1c8   :  { %763 = vrsqrt.f32 %v367_v62 }
 0x1c9   :  { %v362_v22 = vmul.f32 %v1189_v54, %v1052_v11  ;;  %v528_v11 = vadd.f32 %v527_v9, %v526_v48  ;;  %v368_v47 = vadd.f32 1e-05, %v364_v37  ;;  %v1234_v48 = vsub.f32 %v1160_v26, %v540_v31 }
 0x1ca   :  { %v1244_v32 = vsub.f32 %v1217_v51, %v543_v20  ;;  %v1251_v31 = vsub.f32 %v1173_v40, %v545_v1 }
 0x1cb   :  { %v366_v42 = vmul.f32 %v362_v22, %v1189_v54  ;;  %v544_v23 = vmul.f32 0.125, %v528_v11  ;;  %765 = vrsqrt.f32 %v368_v47 }
 0x1cd   :  { %v370_v14 = vadd.f32 1e-05, %v366_v42  ;;  %v1248_v21 = vsub.f32 %v1219_v7, %v544_v23 }
 0x1cf   :  { %767 = vrsqrt.f32 %v370_v14 }
 0x1d1   :  { %v762_v19 = vpop.eup %761 }
 0x1d2   :  { %v764_v39 = vpop.eup %763  ;;  %v377_v18 = vmul.f32 %v762_v19, %v1163_v24 }
 0x1d3   :  { %v375_v33 = vmul.f32 %v764_v39, %v1166_v63 }
 0x1d4   :  { %v381_v38 = vmax.f32 %v377_v18, 0.0  ;;  %v385_v43 = vsub.f32 0.0, %v377_v18 }
 0x1d5   :  { %v379_v24 = vmax.f32 %v375_v33, 0.0  ;;  %v383_v44 = vsub.f32 0.0, %v375_v33  ;;  %v766_v19 = vpop.eup %765 }
 0x1d6   :  { %v389_v17 = vmax.f32 %v385_v43, 0.0  ;;  %v566_v62 = vmul.f32 %v1203_v57, %v381_v38  ;;  %v567_v4 = vmul.f32 %v1205_v45, %v381_v38  ;;  %v568_v9 = vmul.f32 %v1207_v53, %v381_v38 }
 0x1d7   :  { %v569_v63 = vmul.f32 %v1210_v50, %v381_v38  ;;  %v570_v30 = vmul.f32 %v1160_v26, %v381_v38  ;;  %v586_v34 = vmul.f32 %v1212_v52, %v381_v38  ;;  %v587_v41 = vmul.f32 %v1215_v12, %v381_v38 }
 0x1d8   :  { %v588_v28 = vmul.f32 %v1217_v51, %v381_v38  ;;  %v589_v46 = vmul.f32 %v1219_v7, %v381_v38  ;;  %v590_v3 = vmul.f32 %v1173_v40, %v381_v38  ;;  %v606_v22 = vmul.f32 %v1222_v25, %v389_v17 }
 0x1d9   :  { %v607_v5 = vmul.f32 %v1225_v59, %v389_v17  ;;  %v608_v35 = vmul.f32 %v1228_v0, %v389_v17  ;;  %v609_v55 = vmul.f32 %v1231_v8, %v389_v17  ;;  %v610_v2 = vmul.f32 %v1234_v48, %v389_v17  ;;  %v768_v33 = vpop.eup %767 }
 0x1da   :  { %v626_v60 = vmul.f32 %v1238_v49, %v389_v17  ;;  %v627_v61 = vmul.f32 %v1241_v27, %v389_v17  ;;  %v628_v6 = vmul.f32 %v1244_v32, %v389_v17  ;;  %v629_v36 = vmul.f32 %v1248_v21, %v389_v17 }
 0x1db   :  { %v630_v37 = vmul.f32 %v1251_v31, %v389_v17  ;;  %v646_v11 = vadd.f32 %v606_v22, %v566_v62  ;;  %v647_v42 = vadd.f32 %v607_v5, %v567_v4  ;;  %v648_v1 = vadd.f32 %v608_v35, %v568_v9 }
 0x1dc   :  { %v649_v56 = vadd.f32 %v609_v55, %v569_v63  ;;  %v650_v58 = vadd.f32 %v610_v2, %v570_v30  ;;  %v666_v10 = vadd.f32 %v626_v60, %v586_v34  ;;  %v667_v13 = vadd.f32 %v627_v61, %v587_v41 }
 0x1dd   :  { %v668_v15 = vadd.f32 %v628_v6, %v588_v28  ;;  %v669_v16 = vadd.f32 %v629_v36, %v589_v46  ;;  %v670_v20 = vadd.f32 %v630_v37, %v590_v3  ;;  %686 = vst [vmem:[#allocation7 + $0x50] sm:$0xff] %v646_v11  ;;  %687 = vst [vmem:[#allocation7 + $0x58] sm:$0xff] %v647_v42  ;;  %v387_v47 = vmax.f32 %v383_v44, 0.0 }
 0x1de   :  { %688 = vst [vmem:[#allocation7 + $0x60] sm:$0xff] %v648_v1  ;;  %689 = vst [vmem:[#allocation7 + $0x68] sm:$0xff] %v649_v56  ;;  %v556_v23 = vmul.f32 %v1203_v57, %v379_v24  ;;  %v557_v14 = vmul.f32 %v1205_v45, %v379_v24  ;;  %v558_v39 = vmul.f32 %v1207_v53, %v379_v24 }
 0x1df   :  { %690 = vst.msk [vmem:[#allocation7 + $0x70] sm:$0xff] %vm81_vm0, %v650_v58  ;;  %706 = vst [vmem:[#allocation7 + $0xf0] sm:$0xff] %v666_v10  ;;  %v559_v18 = vmul.f32 %v1210_v50, %v379_v24  ;;  %v560_v38 = vmul.f32 %v1160_v26, %v379_v24  ;;  %v576_v43 = vmul.f32 %v1212_v52, %v379_v24 }
 0x1e0   :  { %707 = vst [vmem:[#allocation7 + $0xf8] sm:$0xff] %v667_v13  ;;  %708 = vst [vmem:[#allocation7 + $0x100] sm:$0xff] %v668_v15  ;;  %v577_v44 = vmul.f32 %v1215_v12, %v379_v24  ;;  %v578_v17 = vmul.f32 %v1217_v51, %v379_v24  ;;  %v579_v62 = vmul.f32 %v1219_v7, %v379_v24 }
 0x1e1   :  { %709 = vst [vmem:[#allocation7 + $0x108] sm:$0xff] %v669_v16  ;;  %710 = vst.msk [vmem:[#allocation7 + $0x110] sm:$0xff] %vm81_vm0, %v670_v20  ;;  %v580_v4 = vmul.f32 %v1173_v40, %v379_v24  ;;  %v596_v9 = vmul.f32 %v1222_v25, %v387_v47  ;;  %v597_v63 = vmul.f32 %v1225_v59, %v387_v47 }
 0x1e2   :  { %v598_v30 = vmul.f32 %v1228_v0, %v387_v47  ;;  %v599_v34 = vmul.f32 %v1231_v8, %v387_v47  ;;  %v600_v41 = vmul.f32 %v1234_v48, %v387_v47  ;;  %v616_v28 = vmul.f32 %v1238_v49, %v387_v47 }
 0x1e3   :  { %v617_v46 = vmul.f32 %v1241_v27, %v387_v47  ;;  %v618_v3 = vmul.f32 %v1244_v32, %v387_v47  ;;  %v619_v22 = vmul.f32 %v1248_v21, %v387_v47  ;;  %v620_v24 = vmul.f32 %v1251_v31, %v387_v47 }
 0x1e4   :  { %v636_v5 = vadd.f32 %v596_v9, %v556_v23  ;;  %v637_v35 = vadd.f32 %v597_v63, %v557_v14  ;;  %v638_v55 = vadd.f32 %v598_v30, %v558_v39  ;;  %v639_v2 = vadd.f32 %v599_v34, %v559_v18 }
 0x1e5   :  { %v640_v60 = vadd.f32 %v600_v41, %v560_v38  ;;  %v656_v61 = vadd.f32 %v616_v28, %v576_v43  ;;  %v657_v6 = vadd.f32 %v617_v46, %v577_v44  ;;  %v658_v36 = vadd.f32 %v618_v3, %v578_v17 }
 0x1e6   :  { %v659_v37 = vadd.f32 %v619_v22, %v579_v62  ;;  %v660_v11 = vadd.f32 %v620_v24, %v580_v4  ;;  %676 = vst [vmem:[#allocation7] sm:$0xff] %v636_v5  ;;  %677 = vst [vmem:[#allocation7 + $0x8] sm:$0xff] %v637_v35  ;;  %v376_v42 = vmul.f32 %v766_v19, %v1177_v29 }
 0x1e7   :  { %678 = vst [vmem:[#allocation7 + $0x10] sm:$0xff] %v638_v55  ;;  %679 = vst [vmem:[#allocation7 + $0x18] sm:$0xff] %v639_v2  ;;  %v378_v1 = vmul.f32 %v768_v33, %v1189_v54 }
 0x1e8   :  { %680 = vst.msk [vmem:[#allocation7 + $0x20] sm:$0xff] %vm81_vm0, %v640_v60  ;;  %696 = vst [vmem:[#allocation7 + $0xa0] sm:$0xff] %v656_v61  ;;  %v380_v56 = vmax.f32 %v376_v42, 0.0  ;;  %v384_v58 = vsub.f32 0.0, %v376_v42 }
 0x1e9   :  { %697 = vst [vmem:[#allocation7 + $0xa8] sm:$0xff] %v657_v6  ;;  %698 = vst [vmem:[#allocation7 + $0xb0] sm:$0xff] %v658_v36  ;;  %v382_v10 = vmax.f32 %v378_v1, 0.0  ;;  %v386_v13 = vsub.f32 0.0, %v378_v1 }
 0x1ea   :  { %699 = vst [vmem:[#allocation7 + $0xb8] sm:$0xff] %v659_v37  ;;  %700 = vst.msk [vmem:[#allocation7 + $0xc0] sm:$0xff] %vm81_vm0, %v660_v11  ;;  %v388_v15 = vmax.f32 %v384_v58, 0.0  ;;  %v561_v16 = vmul.f32 %v1203_v57, %v380_v56  ;;  %v562_v20 = vmul.f32 %v1205_v45, %v380_v56  ;;  %v563_v29 = vmul.f32 %v1207_v53, %v380_v56 }
 0x1eb   :  { %v564_v54 = vmul.f32 %v1210_v50, %v380_v56  ;;  %v565_v47 = vmul.f32 %v1160_v26, %v380_v56  ;;  %v581_v19 = vmul.f32 %v1212_v52, %v380_v56  ;;  %v582_v23 = vmul.f32 %v1215_v12, %v380_v56 }
 0x1ec   :  { %v583_v14 = vmul.f32 %v1217_v51, %v380_v56  ;;  %v584_v39 = vmul.f32 %v1219_v7, %v380_v56  ;;  %v585_v18 = vmul.f32 %v1173_v40, %v380_v56  ;;  %v601_v33 = vmul.f32 %v1222_v25, %v388_v15 }
 0x1ed   :  { %v602_v38 = vmul.f32 %v1225_v59, %v388_v15  ;;  %v603_v43 = vmul.f32 %v1228_v0, %v388_v15  ;;  %v604_v44 = vmul.f32 %v1231_v8, %v388_v15  ;;  %v605_v17 = vmul.f32 %v1234_v48, %v388_v15 }
 0x1ee   :  { %v621_v62 = vmul.f32 %v1238_v49, %v388_v15  ;;  %v622_v4 = vmul.f32 %v1241_v27, %v388_v15  ;;  %v623_v9 = vmul.f32 %v1244_v32, %v388_v15  ;;  %v624_v63 = vmul.f32 %v1248_v21, %v388_v15 }
 0x1ef   :  { %v625_v30 = vmul.f32 %v1251_v31, %v388_v15  ;;  %v641_v34 = vadd.f32 %v601_v33, %v561_v16  ;;  %v642_v41 = vadd.f32 %v602_v38, %v562_v20  ;;  %v643_v28 = vadd.f32 %v603_v43, %v563_v29 }
 0x1f0   :  { %v644_v46 = vadd.f32 %v604_v44, %v564_v54  ;;  %v645_v3 = vadd.f32 %v605_v17, %v565_v47  ;;  %v661_v22 = vadd.f32 %v621_v62, %v581_v19  ;;  %v662_v24 = vadd.f32 %v622_v4, %v582_v23 }
 0x1f1   :  { %v663_v5 = vadd.f32 %v623_v9, %v583_v14  ;;  %v664_v35 = vadd.f32 %v624_v63, %v584_v39  ;;  %v665_v55 = vadd.f32 %v625_v30, %v585_v18  ;;  %681 = vst [vmem:[#allocation7 + $0x28] sm:$0xff] %v641_v34  ;;  %682 = vst [vmem:[#allocation7 + $0x30] sm:$0xff] %v642_v41  ;;  %v390_v2 = vmax.f32 %v386_v13, 0.0 }
 0x1f2   :  { %683 = vst [vmem:[#allocation7 + $0x38] sm:$0xff] %v643_v28  ;;  %684 = vst [vmem:[#allocation7 + $0x40] sm:$0xff] %v644_v46  ;;  %v571_v60 = vmul.f32 %v1203_v57, %v382_v10  ;;  %v572_v61 = vmul.f32 %v1205_v45, %v382_v10  ;;  %v573_v6 = vmul.f32 %v1207_v53, %v382_v10 }
 0x1f3   :  { %685 = vst.msk [vmem:[#allocation7 + $0x48] sm:$0xff] %vm81_vm0, %v645_v3  ;;  %701 = vst [vmem:[#allocation7 + $0xc8] sm:$0xff] %v661_v22  ;;  %v574_v36 = vmul.f32 %v1210_v50, %v382_v10  ;;  %v575_v37 = vmul.f32 %v1160_v26, %v382_v10  ;;  %v591_v11 = vmul.f32 %v1212_v52, %v382_v10 }
 0x1f4   :  { %702 = vst [vmem:[#allocation7 + $0xd0] sm:$0xff] %v662_v24  ;;  %703 = vst [vmem:[#allocation7 + $0xd8] sm:$0xff] %v663_v5  ;;  %v592_v42 = vmul.f32 %v1215_v12, %v382_v10  ;;  %v593_v1 = vmul.f32 %v1217_v51, %v382_v10  ;;  %v594_v57 = vmul.f32 %v1219_v7, %v382_v10 }
 0x1f5   :  { %704 = vst [vmem:[#allocation7 + $0xe0] sm:$0xff] %v664_v35  ;;  %705 = vst.msk [vmem:[#allocation7 + $0xe8] sm:$0xff] %vm81_vm0, %v665_v55  ;;  %v595_v45 = vmul.f32 %v1173_v40, %v382_v10  ;;  %v611_v53 = vmul.f32 %v1222_v25, %v390_v2  ;;  %v612_v50 = vmul.f32 %v1225_v59, %v390_v2 }
 0x1f6   :  { %v613_v56 = vmul.f32 %v1228_v0, %v390_v2  ;;  %v614_v58 = vmul.f32 %v1231_v8, %v390_v2  ;;  %v615_v26 = vmul.f32 %v1234_v48, %v390_v2  ;;  %v631_v52 = vmul.f32 %v1238_v49, %v390_v2 }
 0x1f7   :  { %v632_v12 = vmul.f32 %v1241_v27, %v390_v2  ;;  %v633_v51 = vmul.f32 %v1244_v32, %v390_v2  ;;  %v634_v7 = vmul.f32 %v1248_v21, %v390_v2  ;;  %v635_v40 = vmul.f32 %v1251_v31, %v390_v2 }
 0x1f8   :  { %v651_v25 = vadd.f32 %v611_v53, %v571_v60  ;;  %v652_v59 = vadd.f32 %v612_v50, %v572_v61  ;;  %v653_v10 = vadd.f32 %v613_v56, %v573_v6  ;;  %v654_v0 = vadd.f32 %v614_v58, %v574_v36 }
 0x1f9   :  { %v655_v13 = vadd.f32 %v615_v26, %v575_v37  ;;  %v671_v8 = vadd.f32 %v631_v52, %v591_v11  ;;  %v672_v15 = vadd.f32 %v632_v12, %v592_v42  ;;  %v673_v48 = vadd.f32 %v633_v51, %v593_v1 }
 0x1fa   :  { %v674_v16 = vadd.f32 %v634_v7, %v594_v57  ;;  %v675_v49 = vadd.f32 %v635_v40, %v595_v45  ;;  %691 = vst [vmem:[#allocation7 + $0x78] sm:$0xff] %v651_v25  ;;  %692 = vst [vmem:[#allocation7 + $0x80] sm:$0xff] %v652_v59 }
 0x1fb   :  { %693 = vst [vmem:[#allocation7 + $0x88] sm:$0xff] %v653_v10  ;;  %694 = vst [vmem:[#allocation7 + $0x90] sm:$0xff] %v654_v0 }
 0x1fc   :  { %695 = vst.msk [vmem:[#allocation7 + $0x98] sm:$0xff] %vm81_vm0, %v655_v13  ;;  %711 = vst [vmem:[#allocation7 + $0x118] sm:$0xff] %v671_v8 }
 0x1fd   :  { %712 = vst [vmem:[#allocation7 + $0x120] sm:$0xff] %v672_v15  ;;  %713 = vst [vmem:[#allocation7 + $0x128] sm:$0xff] %v673_v48 }
 0x1fe   :  { %714 = vst [vmem:[#allocation7 + $0x130] sm:$0xff] %v674_v16  ;;  %715 = vst.msk [vmem:[#allocation7 + $0x138] sm:$0xff] %vm81_vm0, %v675_v49 }
 0x1ff   :  { %824 = shalt.err (!%p821_p6)
}
 0x200   :  { %s825_s17 = scalar_lea.hbm %s1361_s3, 5120 }
 0x201   :  { %p826_p7 = scmp.ne.s32.totalorder %s1361_s3, %s825_s17  ;;  %p829_p8 = scmp.lt.u32.totalorder %s825_s17, %s1361_s3 }
 0x203   :  { %p831_p9 = pnand %p829_p8, %p826_p7 }
 0x205   :  { %834 = shalt.err (!%p831_p9)
}
 0x206   :  { %727 = dma.vmem_to_hbm [thread:$0]  %s722_s13, 5120, %s1361_s3, [#allocation4], %s842_s22, %s842_s22, %s843_s23  }
 0x207   :  { %839 = dma.done.wait [#allocation4], 5120  }
 0x208   :  { %840 = vsyncadd [#allocation4], 4294962176 }
 0x209   :  { %731 = vsyncpa [#allocation3], 1 }
 0x20a   :  { %732 = vsyncpa [#allocation6], 1 }
 0x20b   :  { %733 = vsyncpa [#allocation4], 1 }

</bundles_post_ra>
